<compile_context>
chip_gen: v7x
topology: tpu7x:2x2x1
jax: 0.10.0
libtpu: 0.0.40
codegen_flags: <defaults>
</compile_context>

<pallas_src>
import jax
import jax.numpy as jnp
from jax.experimental import pallas as pl
from jax.experimental.pallas import tpu as pltpu

LANE = 128


def _cdiv(a, b):
    return -(-a // b)


def _round_down(x, m):
    return (x // m) * m


def _vmem_capacity_bytes():
    # Per-generation physical VMEM (v5e/v6e: 128 MiB, v7x: 64 MiB per TC).
    try:
        return int(pltpu.get_tpu_info().vmem_capacity_bytes)
    except Exception:
        return 64 << 20  # conservative (v7x-sized) fallback


def linear_regression_forward(x, weight, bias, *,
                              max_rows_per_tile=4096, max_lanes_per_tile=8192):
    """x: (B, D); weight: (1, D) (PyTorch nn.Linear layout); bias: (1,).

    Returns (B, 1) f32, matching nn.Linear(in_features=D, out_features=1).
    """
    x = x.astype(jnp.float32)
    weight = weight.astype(jnp.float32)
    bias = bias.astype(jnp.float32)

    B, D = x.shape
    itemsize = 4  # f32

    # ---- Per-generation tile sizing --------------------------------------
    vmem_cap = _vmem_capacity_bytes()
    # Per double-buffered X stream budget: ~21 MiB on v5e/v6e, ~10 MiB on v7x.
    x_budget = min(24 << 20, vmem_cap // 6)

    # K (feature) tile: whole row when a >=256-row double-buffered tile fits,
    # otherwise a multiple-of-128 chunk (reduction grid axis).
    min_rows = 256
    if (2 * min_rows * D * itemsize <= x_budget or D <= LANE) and D <= max_lanes_per_tile:
        tk = D
    else:
        lane_cap = max(LANE, _round_down(max_lanes_per_tile, LANE))
        tk = max(LANE, min(lane_cap,
                           _round_down(x_budget // (2 * min_rows * itemsize), LANE)))
    nk = _cdiv(D, tk)

    # M (batch) tile: as big as the budget allows (multiple of 128 so the
    # lane-dense output blocks stay aligned), capped by max_rows_per_tile.
    rows_fit = max(LANE, _round_down(x_budget // (2 * tk * itemsize), LANE))
    tm = min(rows_fit, max(LANE, _round_down(max_rows_per_tile, LANE)))
    if tm >= B:
        # Single tile covering the whole batch: block == full dim, so no
        # padding and no (8,128) divisibility requirement.
        tm = B
    nm = _cdiv(B, tm)

    # ---- Kernel ------------------------------------------------------------
    def kernel(x_ref, w_ref, b_ref, o_ref):
        k = pl.program_id(1)

        @pl.when(k == 0)
        def _init():
            # Resident (1, tm) output block: start from the bias.
            o_ref[...] = jnp.full(o_ref.shape, b_ref[0, 0], o_ref.dtype)

        # VPU multiply (weight row broadcast over sublanes) ...
        prod = x_ref[...] * w_ref[...]                       # (tm, tk)
        if D % tk != 0:
            # Static-only branch: mask lanes past D on the ragged last K tile
            # so OOB garbage never contaminates the accumulation.
            lane_idx = jax.lax.broadcasted_iota(jnp.int32, prod.shape, 1)
            prod = jnp.where(k * tk + lane_idx < D, prod, 0.0)
        # ... XLU lane reduce, relayout to a lane-dense (1, tm) row, accumulate.
        o_ref[...] += jnp.sum(prod, axis=-1)[None, :]

    # Explicit scoped-VMEM limit (double-buffered X + W blocks + output block).
    needed = 2 * (tm * tk + tk + tm) * itemsize
    vmem_limit = int(min(vmem_cap * 0.9, max(needed + (8 << 20), 32 << 20)))

    out = pl.pallas_call(
        kernel,
        # Lane-dense output: one (1, tm) row per batch tile.
        out_shape=jax.ShapeDtypeStruct((1, B), jnp.float32),
        grid=(nm, nk),
        in_specs=[
            # X: pipelined (tm, tk) tiles; ragged batch tail handled by the
            # Pallas block boundary (no jnp.pad copy of X in HBM).
            pl.BlockSpec((tm, tk), lambda i, k: (i, k)),
            # Weight row chunk: independent of i -> reused from VMEM.
            pl.BlockSpec((1, tk), lambda i, k: (0, k)),
            # Bias: scalar in SMEM (no padded VMEM tile, no per-step DMA).
            pl.BlockSpec(memory_space=pltpu.MemorySpace.SMEM),
        ],
        out_specs=pl.BlockSpec((1, tm), lambda i, k: (0, i)),
        compiler_params=pltpu.CompilerParams(
            # Batch tiles independent -> "parallel" (v7x: shard across 2 TCs);
            # K is the reduction -> "arbitrary", last.
            dimension_semantics=("parallel", "arbitrary"),
            vmem_limit_bytes=vmem_limit,
        ),
    )(x, weight, bias.reshape(1, 1))

    # (1, B) -> (B, 1); row-major order is preserved so element j -> row j.
    return out.reshape(B, 1)


if __name__ == "__main__":
    key = jax.random.PRNGKey(0)
    k_x, k_w = jax.random.split(key)

    batch, in_features = 8, 32  # LazyLinear infers in_features from X

    # Deterministic parameter init matching the module's __init__:
    #   weight ~ N(0, 0.01), shape (1, in_features); bias = 0, shape (1,)
    weight = 0.01 * jax.random.normal(k_w, (1, in_features), dtype=jnp.float32)
    bias = jnp.zeros((1,), dtype=jnp.float32)

    x = jax.random.normal(k_x, (batch, in_features), dtype=jnp.float32)

    y = linear_regression_forward(x, weight, bias)
    jax.block_until_ready(y)

    # Reference check against plain JAX (PyTorch nn.Linear semantics).
    y_ref = x @ weight.T + bias
    assert y.shape == (batch, 1)
    assert jnp.allclose(y, y_ref, atol=1e-5, rtol=1e-5)

    print("KERNEL_OK")
</pallas_src>

<mosaic_0001>
module attributes {stable_mosaic.version = 11 : i64} {
  func.func @kernel(%arg0: i32, %arg1: i32, %arg2: memref<8x32xf32, #tpu.memory_space<vmem>>, %arg3: memref<1x32xf32, #tpu.memory_space<vmem>>, %arg4: memref<1x1xf32, #tpu.memory_space<smem>>, %arg5: memref<1x8xf32, #tpu.memory_space<vmem>>) attributes {dimension_semantics = [#tpu.dimension_semantics<parallel>, #tpu.dimension_semantics<arbitrary>], iteration_bounds = array<i64: 1, 1>, scalar_prefetch = 0 : i64, scratch_operands = 0 : i64, tpu.core_type = #tpu.core_type<tc>, window_params = [{transform_indices = @transform_0, window_bounds = array<i64: 8, 32>}, {transform_indices = @transform_1, window_bounds = array<i64: 1, 32>}, {transform_indices = @transform_2, window_bounds = array<i64: 1, 1>}, {transform_indices = @transform_3, window_bounds = array<i64: 1, 8>}]} {
    %c0_i32 = arith.constant 0 : i32
    %0 = arith.cmpi eq, %arg1, %c0_i32 : i32
    %1 = arith.extui %0 : i1 to i32
    %c0_i32_0 = arith.constant 0 : i32
    %2 = arith.cmpi ne, %1, %c0_i32_0 : i32
    scf.if %2 {
      %c0_8 = arith.constant 0 : index
      %c0_9 = arith.constant 0 : index
      %12 = memref.load %arg4[%c0_8, %c0_9] : memref<1x1xf32, #tpu.memory_space<smem>>
      %13 = vector.broadcast %12 : f32 to vector<1x8xf32>
      %c0_10 = arith.constant 0 : index
      %c0_11 = arith.constant 0 : index
      %14 = vector.load %arg5[%c0_10, %c0_11] : memref<1x8xf32, #tpu.memory_space<vmem>>, vector<1x8xf32>
      tpu.vector_store %arg5[%c0_10, %c0_11], %13 {strides = array<i32>} : memref<1x8xf32, #tpu.memory_space<vmem>>, vector<1x8xf32>,
    } else {
    }
    %c0 = arith.constant 0 : index
    %c0_1 = arith.constant 0 : index
    %3 = vector.load %arg2[%c0, %c0_1] : memref<8x32xf32, #tpu.memory_space<vmem>>, vector<8x32xf32>
    %c0_2 = arith.constant 0 : index
    %c0_3 = arith.constant 0 : index
    %4 = vector.load %arg3[%c0_2, %c0_3] : memref<1x32xf32, #tpu.memory_space<vmem>>, vector<1x32xf32>
    %5 = vector.broadcast %4 : vector<1x32xf32> to vector<8x32xf32>
    %6 = arith.mulf %3, %5 : vector<8x32xf32>
    %c0_4 = arith.constant 0 : index
    %c0_5 = arith.constant 0 : index
    %7 = vector.load %arg5[%c0_4, %c0_5] : memref<1x8xf32, #tpu.memory_space<vmem>>, vector<1x8xf32>
    %cst = arith.constant dense<0.000000e+00> : vector<8xf32>
    %8 = vector.multi_reduction <add>, %6, %cst [1] : vector<8x32xf32> to vector<8xf32>
    %9 = vector.shape_cast %8 : vector<8xf32> to vector<1x8xf32>
    %10 = arith.addf %7, %9 : vector<1x8xf32>
    %c0_6 = arith.constant 0 : index
    %c0_7 = arith.constant 0 : index
    %11 = vector.load %arg5[%c0_6, %c0_7] : memref<1x8xf32, #tpu.memory_space<vmem>>, vector<1x8xf32>
    tpu.vector_store %arg5[%c0_6, %c0_7], %10 {strides = array<i32>} : memref<1x8xf32, #tpu.memory_space<vmem>>, vector<1x8xf32>,
    return
  }
  func.func @transform_0(%arg0: i32, %arg1: i32) -> (i32, i32) {
    %c0_i32 = arith.constant 0 : i32
    return %arg0, %arg1 : i32, i32
  }
  func.func @transform_1(%arg0: i32, %arg1: i32) -> (i32, i32) {
    %c0_i32 = arith.constant 0 : i32
    %c0_i32_0 = arith.constant 0 : i32
    return %c0_i32, %arg1 : i32, i32
  }
  func.func @transform_2(%arg0: i32, %arg1: i32) -> (i32, i32) {
    %c0_i32 = arith.constant 0 : i32
    %c0_i32_0 = arith.constant 0 : i32
    %c0_i32_1 = arith.constant 0 : i32
    return %c0_i32, %c0_i32_0 : i32, i32
  }
  func.func @transform_3(%arg0: i32, %arg1: i32) -> (i32, i32) {
    %c0_i32 = arith.constant 0 : i32
    %c0_i32_0 = arith.constant 0 : i32
    return %c0_i32, %arg0 : i32, i32
  }
}

</mosaic_0001>

<bundles_post_ra>
// kernel: tpu_custom_call.1
= control target key start
LH: loop header
LB: loop body
LE: loop exit
PB: predicated region body
PF: predicated region fallthrough
CT: control target
= control target key end

     0   :  { %9 = vsyncpa [#allocation4], 0  ;;  %s284_s0 = inlined_call_operand.hbm [shape: f32[8,32], index: 0, kind: input, shape index: {}]   ;;  %s285_s1 = inlined_call_operand.vmem [shape: f32[1,32], index: 1, kind: input, shape index: {}]   ;;  %s286_s2 = inlined_call_operand.<no memory space> [shape: f32[1,1], index: 2, kind: input, shape index: {}]   ;;  %s287_s3 = inlined_call_operand.hbm [shape: f32[1,8], index: 3, kind: output, shape index: {}]  }
   0x1   :  { %10 = vsyncpa [#allocation5], 0  ;;  %s228_s12 = smov [#allocation3]   ;;  %s180_s16 = scalar_lea.hbm %s284_s0, 128 }
   0x2   :  { %s17_s13 = sshll.u32 %s228_s12, 4  ;;  %p181_p0 = scmp.ne.s32.totalorder %s284_s0, %s180_s16  ;;  %s18_s13 = int_to_ptr.vmem [resolvable:$true] %s17_s13 }
   0x3   :  { %p184_p1 = scmp.lt.u32.totalorder %s180_s16, %s284_s0 }
   0x5   :  { %p186_p2 = pnand %p184_p1, %p181_p0 }
   0x7   :  { %189 = shalt.err (!%p186_p2)
}
   0x8   :  { %s190_s21 = scalar_lea.vmem %s18_s13, 128  ;;  %p195_p4 = scmp.lt.s32.totalorder %s18_s13, %s18_s13 }
   0x9   :  { %p191_p3 = scmp.ne.s32.totalorder %s18_s13, %s190_s21  ;;  %p196_p5 = scmp.lt.s32.totalorder %s190_s21, %s190_s21 }
   0xb   :  { %p197_p6 = por %p196_p5, %p195_p4 }
   0xd   :  { %p198_p7 = pnand %p197_p6, %p191_p3 }
   0xf   :  { %201 = shalt.err (!%p198_p7)
}
  0x10   :  { %20 = dma.hbm_to_vmem [thread:$0]  %s284_s0, 128, %s18_s13, [#allocation4]  }
  0x11   :  { %224 = dma.done.wait [#allocation4], 128  }
  0x12   :  { %225 = vsyncadd [#allocation4], 4294967168  ;;  %v33_v0 = vstv %s286_s2  ;;  %vm34_vm0 = vcmask 57344   ;;  %v36_v1 = vld [vmem:[#allocation3] sm:$0xff]  ;;  %vm46_vm1 = vcmask 261120   ;;  %v229_v5 = vmov 0  }
  0x13   :  { %35 = vst.msk [vmem:[#allocation6] sm:$0x1] %vm34_vm0, %v33_v0  ;;  %v174_v2 = vld [vmem:[%s285_s1] ss:$0 sm:$0xff]  ;;  %179 = vset.pattern.permute.xlu0 %v229_v5  ;;  %v51_v6 = vlaneseq  ;;  %v230_v10 = vmov 1966171168  }
  0x14   :  { %v44_v3 = vmul.f32 %v174_v2, %v36_v1  ;;  %v88_v11 = vunpack.c.l.s4 %v230_v10  ;;  %s231_s0 = smov [#allocation6]  }
  0x15   :  { %v52_v7 = vshrl.u32 %v51_v6, 7  ;;  %v136_v8 = vand.u32 127, %v51_v6  ;;  %s165_s1 = sshll.u32 %s231_s0, 4  ;;  %s166_s1 = int_to_ptr.vmem [resolvable:$true] %s165_s1 }
  0x16   :  { %v47_v4 = vsel %vm46_vm1, %v44_v3, 0.0  ;;  %v89_v12 = vunpack.c.0.s8 %v88_v11  ;;  %s202_s2 = scalar_lea.vmem %s166_s1, 16  ;;  %s206_s28 = scalar_lea.vmem %s166_s1, 32 }
  0x17   :  { %48 = vadd.xlane.f32.xlu0 %v47_v4  ;;  %v139_v9 = vsub.s32 %v136_v8, %v52_v7  ;;  %v53_v13 = vsub.s32 0, %v52_v7  ;;  %v57_v14 = vsub.s32 1, %v52_v7  ;;  %v61_v15 = vsub.s32 2, %v52_v7  ;;  %p203_p8 = scmp.ne.s32.totalorder %s166_s1, %s202_s2  ;;  %p207_p9 = scmp.lt.s32.totalorder %s166_s1, %s166_s1 }
  0x18   :  { %v65_v16 = vsub.s32 3, %v52_v7  ;;  %v69_v17 = vsub.s32 4, %v52_v7  ;;  %v73_v18 = vsub.s32 5, %v52_v7  ;;  %v77_v19 = vsub.s32 6, %v52_v7  ;;  %p208_p10 = scmp.lt.s32.totalorder %s206_s28, %s202_s2 }
  0x19   :  { %v81_v20 = vsub.s32 7, %v52_v7  ;;  %v92_v22 = vsub.s32 %v89_v12, %v52_v7 }
  0x1a   :  { %v45_v47 = vld [vmem:[#allocation6] sm:$0x1]  ;;  %p209_p11 = por %p208_p10, %p207_p9 }
  0x1c   :  { %p210_p12 = pnand %p209_p11, %p203_p8 }
  0xa4   :  { %v49_v21 = vpop.xlane.xlu0 %48 }
  0xa5   :  { %v54_v23 = vrot.slane %v49_v21, %v53_v13  ;;  %v58_v24 = vrot.slane %v49_v21, %v57_v14  ;;  %v62_v25 = vrot.slane %v49_v21, %v61_v15  ;;  %v66_v26 = vrot.slane %v49_v21, %v65_v16 }
  0xa6   :  { %v70_v27 = vrot.slane %v49_v21, %v69_v17  ;;  %v74_v28 = vrot.slane %v49_v21, %v73_v18  ;;  %v78_v29 = vrot.slane %v49_v21, %v77_v19  ;;  %v82_v30 = vrot.slane %v49_v21, %v81_v20 }
  0xa7   :  { %v83_v31 = vcombine.low %v54_v23, %v58_v24  ;;  %v84_v32 = vcombine.low %v62_v25, %v66_v26 }
  0xa8   :  { %v85_v33 = vcombine.low %v70_v27, %v74_v28  ;;  %v86_v34 = vcombine.low %v78_v29, %v82_v30 }
  0xa9   :  { %v93_v35 = vrot.slane %v83_v31, %v92_v22  ;;  %v100_v36 = vrot.slane %v84_v32, %v92_v22 }
  0xaa   :  { %v107_v37 = vrot.slane %v85_v33, %v92_v22  ;;  %v114_v38 = vrot.slane %v86_v34, %v92_v22 }
  0xab   :  { %v115_v39 = vcombine.low %v93_v35, %v100_v36 }
  0xac   :  { %v116_v40 = vcombine.low %v107_v37, %v114_v38 }
  0xad   :  { %v123_v41 = vrot.slane %v115_v39, %v92_v22 }
  0xae   :  { %v130_v42 = vrot.slane %v116_v40, %v92_v22 }
  0xb0   :  { %v131_v43 = vcombine.low %v123_v41, %v130_v42 }
  0xb2   :  { %133 = vperm.xlu0 %179, %v131_v43  }
 0x131   :  { %v134_v44 = vpop.permute.xlu0 %133 }
 0x132   :  { %v140_v45 = vrot.slane %v134_v44, %v139_v9 }
 0x134   :  { %v147_v46 = vrot.slane %v140_v45, %v92_v22 }
 0x136   :  { %v154_v48 = vrot.slane %v147_v46, %v92_v22 }
 0x138   :  { %v156_v49 = vadd.f32 %v154_v48, %v45_v47 }
 0x13a   :  { %158 = vst.msk [vmem:[#allocation6] sm:$0x1] %vm34_vm0, %v156_v49 }
 0x13b   :  { %213 = shalt.err (!%p210_p12)
}
 0x13c   :  { %s214_s4 = scalar_lea.hbm %s287_s3, 16 }
 0x13d   :  { %p215_p13 = scmp.ne.s32.totalorder %s287_s3, %s214_s4  ;;  %p218_p0 = scmp.lt.u32.totalorder %s214_s4, %s287_s3 }
 0x13f   :  { %p220_p1 = pnand %p218_p0, %p215_p13 }
 0x141   :  { %223 = shalt.err (!%p220_p1)
}
 0x142   :  { %168 = dma.vmem_to_hbm [thread:$0]  %s166_s1, 16, %s287_s3, [#allocation5]  }
 0x143   :  { %226 = dma.done.wait [#allocation5], 16  }
 0x144   :  { %227 = vsyncadd [#allocation5], 4294967280 }
 0x145   :  { %172 = vsyncpa [#allocation4], 1 }
 0x146   :  { %173 = vsyncpa [#allocation5], 1 }

</bundles_post_ra>
